<compile_context>
chip_gen: v5e
topology: v5e:2x2
jax: 0.10.0
libtpu: 0.0.40
codegen_flags: <defaults>
</compile_context>

<pallas_src>
import jax
import jax.numpy as jnp
from jax import lax
from jax.experimental import pallas as pl
from jax.experimental.pallas import tpu as pltpu

LANE = 128  # TPU vreg lane width


def lstm_fc_kernel(xproj_ref, whh_ref, wfc_ref, bfc_ref, out_ref):
    """Recurrent part of a single-layer LSTM + final Linear, all in VMEM.

    xproj_ref : (S, B, 4H) f32  -- x_t @ W_ih + (b_ih + b_hh), gate cols (i,f,o,g)
    whh_ref   : (H, 4H)   f32   -- recurrent weights, gate cols (i,f,o,g)
    wfc_ref   : (H, Cp)   f32   -- fc_1 weights, zero-padded to Cp=128 lanes
    bfc_ref   : (1, Cp)   f32
    out_ref   : (B, Cp)   f32
    """
    S, B, _ = xproj_ref.shape
    H = whh_ref.shape[0]

    whh = whh_ref[...]  # (H, 4H) -- loaded once, reused every step

    def step(t, carry):
        h, c = carry
        # Pre-projected input (bias already folded in): only the serial
        # h @ W_hh matmul remains on the critical path.
        gates = xproj_ref[t] + jnp.dot(h, whh, preferred_element_type=jnp.float32)
        # Gate order after offline permutation: (i, f, o, g).
        sig = jax.nn.sigmoid(gates[:, : 3 * H])   # one wide sigmoid for i, f, o
        i_g = sig[:, 0 * H:1 * H]
        f_g = sig[:, 1 * H:2 * H]
        o_g = sig[:, 2 * H:3 * H]
        g_g = jnp.tanh(gates[:, 3 * H:])
        c_new = f_g * c + i_g * g_g
        h_new = o_g * jnp.tanh(c_new)
        return (h_new, c_new)

    h0 = jnp.zeros((B, H), jnp.float32)
    c0 = jnp.zeros((B, H), jnp.float32)
    # Short static trip count: fully unroll so the LLO scheduler can interleave
    # the next step's MXU push with the current step's EUP/VPU work.
    h_final, _ = lax.fori_loop(0, S, step, (h0, c0), unroll=True)

    # fc_1 applied to the final hidden state; single lane-dense (B, 128) store.
    out_ref[...] = (jnp.dot(h_final, wfc_ref[...],
                            preferred_element_type=jnp.float32)
                    + bfc_ref[...])


def init_raw_params(key, text_dim, claim_dim, num_classes):
    """Deterministic synthetic parameters matching nn.LSTM / nn.Linear shapes."""
    H = text_dim + claim_dim
    ks = jax.random.split(key, 6)
    scale = 1.0 / jnp.sqrt(jnp.float32(H))

    def u(k, shape):
        return jax.random.uniform(k, shape, jnp.float32, -scale, scale)

    return {
        "w_ih": u(ks[0], (4 * H, 2)),        # PyTorch weight_ih_l0
        "w_hh": u(ks[1], (4 * H, H)),        # PyTorch weight_hh_l0
        "b_ih": u(ks[2], (4 * H,)),
        "b_hh": u(ks[3], (4 * H,)),
        "w_fc": u(ks[4], (num_classes, H)),  # fc_1.weight
        "b_fc": u(ks[5], (num_classes,)),    # fc_1.bias
    }


def prep_kernel_params(raw):
    """Transpose / permute / pad PyTorch-layout weights into kernel layout."""
    H = raw["w_hh"].shape[1]
    C = raw["w_fc"].shape[0]
    # Gate-column permutation: PyTorch (i, f, g, o) -> kernel (i, f, o, g),
    # so one sigmoid covers the first 3H columns.
    perm = jnp.concatenate([jnp.arange(0 * H, 1 * H),
                            jnp.arange(1 * H, 2 * H),
                            jnp.arange(3 * H, 4 * H),
                            jnp.arange(2 * H, 3 * H)])
    w_ih_t = raw["w_ih"].T[:, perm]                              # (2, 4H)
    w_hh_t = raw["w_hh"].T[:, perm]                              # (H, 4H)
    b_gates = (raw["b_ih"] + raw["b_hh"])[perm][None, :]         # (1, 4H)
    # Pad fc_1 to a full 128-lane output so the final store is unmasked.
    c_pad = max(LANE, C)
    w_fc_t = jnp.zeros((H, c_pad), jnp.float32).at[:, :C].set(raw["w_fc"].T)
    b_fc = jnp.zeros((1, c_pad), jnp.float32).at[:, :C].set(raw["b_fc"][None, :])
    return {
        "w_ih_t": w_ih_t,
        "w_hh_t": w_hh_t,
        "b_gates": b_gates,
        "w_fc_t": w_fc_t,
        "b_fc": b_fc,
    }


def pure_text_model_forward(claim, text, kparams, num_classes):
    """claim, text: (B, S, 1) float32 (PyTorch batch_first inputs)."""
    combined = jnp.concatenate([text, claim], axis=2)     # (B, S, 2)
    x = jnp.transpose(combined, (1, 0, 2))                # (S, B, 2), time-major
    S, B, _ = x.shape
    H = kparams["w_hh_t"].shape[0]
    c_pad = kparams["w_fc_t"].shape[1]

    # Hoisted input projection + fused gate bias, done once by XLA (tiny einsum).
    # Result is lane-dense: (S, B, 4H) with 4H == 128 for H == 32.
    x_proj = (jnp.einsum("sbi,ig->sbg", x, kparams["w_ih_t"],
                         preferred_element_type=jnp.float32)
              + kparams["b_gates"])

    flops = 2 * S * B * H * 4 * H + 2 * B * H * c_pad
    transcendentals = S * B * 5 * H
    bytes_accessed = 4 * (x_proj.size + kparams["w_hh_t"].size
                          + kparams["w_fc_t"].size + kparams["b_fc"].size
                          + B * c_pad)

    vmem = pl.BlockSpec(memory_space=pltpu.MemorySpace.VMEM)
    out_pad = pl.pallas_call(
        lstm_fc_kernel,
        out_shape=jax.ShapeDtypeStruct((B, c_pad), jnp.float32),
        in_specs=[vmem, vmem, vmem, vmem],
        out_specs=vmem,
        cost_estimate=pl.CostEstimate(flops=flops,
                                      transcendentals=transcendentals,
                                      bytes_accessed=bytes_accessed),
    )(x_proj, kparams["w_hh_t"], kparams["w_fc_t"], kparams["b_fc"])

    logits = out_pad[:, :num_classes]
    # PyTorch returns fc_1(h) where h is (num_layers=1, B, H) -> (1, B, C).
    return logits[None, :, :]
    # TODO(synk): add a leading batch-tile grid axis with
    # dimension_semantics=("parallel",) if B ever grows beyond toy scale (v7x 2-TC).


def reference_forward(claim, text, raw):
    """Pure-JAX reference with original PyTorch gate order, for correctness."""
    combined = jnp.concatenate([text, claim], axis=2)
    x = jnp.transpose(combined, (1, 0, 2))                # (S, B, 2)
    B = x.shape[1]
    H = raw["w_hh"].shape[1]
    w_ih_t = raw["w_ih"].T
    w_hh_t = raw["w_hh"].T
    b = (raw["b_ih"] + raw["b_hh"])[None, :]

    def step(carry, x_t):
        h, c = carry
        gates = x_t @ w_ih_t + h @ w_hh_t + b
        i = jax.nn.sigmoid(gates[:, :H])
        f = jax.nn.sigmoid(gates[:, H:2 * H])
        g = jnp.tanh(gates[:, 2 * H:3 * H])
        o = jax.nn.sigmoid(gates[:, 3 * H:])
        c = f * c + i * g
        h = o * jnp.tanh(c)
        return (h, c), None

    (h, _), _ = lax.scan(step, (jnp.zeros((B, H)), jnp.zeros((B, H))), x)
    return (h @ raw["w_fc"].T + raw["b_fc"][None, :])[None]


if __name__ == "__main__":
    # Small shapes consistent with the module's forward.
    B, S = 2, 8
    text_dim, claim_dim, num_classes = 16, 16, 4   # hidden H = 32, 4H = 128

    key = jax.random.PRNGKey(0)
    k_claim, k_text, k_params = jax.random.split(key, 3)
    claim = jax.random.normal(k_claim, (B, S, 1), dtype=jnp.float32)
    text = jax.random.normal(k_text, (B, S, 1), dtype=jnp.float32)

    raw = init_raw_params(k_params, text_dim, claim_dim, num_classes)
    kparams = prep_kernel_params(raw)

    logits = jax.block_until_ready(
        pure_text_model_forward(claim, text, kparams, num_classes))
    ref = jax.block_until_ready(reference_forward(claim, text, raw))

    assert logits.shape == (1, B, num_classes), logits.shape
    assert jnp.allclose(logits, ref, rtol=1e-4, atol=1e-4), (logits, ref)
    print("KERNEL_OK")
</pallas_src>

<mosaic_0001>
module attributes {stable_mosaic.version = 11 : i64} {
  func.func @lstm_fc_kernel(%arg0: memref<8x2x128xf32, #tpu.memory_space<vmem>>, %arg1: memref<32x128xf32, #tpu.memory_space<vmem>>, %arg2: memref<32x128xf32, #tpu.memory_space<vmem>>, %arg3: memref<1x128xf32, #tpu.memory_space<vmem>>, %arg4: memref<2x128xf32, #tpu.memory_space<vmem>>) attributes {dimension_semantics = [], scalar_prefetch = 0 : i64, scratch_operands = 0 : i64, tpu.core_type = #tpu.core_type<tc>} {
    %c0 = arith.constant 0 : index
    %c0_0 = arith.constant 0 : index
    %0 = vector.load %arg1[%c0, %c0_0] : memref<32x128xf32, #tpu.memory_space<vmem>>, vector<32x128xf32>
    %cst = arith.constant 0.000000e+00 : f32
    %1 = vector.broadcast %cst : f32 to vector<2x32xf32>
    %cst_1 = arith.constant 0.000000e+00 : f32
    %2 = vector.broadcast %cst_1 : f32 to vector<2x32xf32>
    %c0_i32 = arith.constant 0 : i32
    %3 = arith.index_cast %c0_i32 : i32 to index
    %c0_2 = arith.constant 0 : index
    %c0_3 = arith.constant 0 : index
    %4 = vector.load %arg0[%3, %c0_2, %c0_3] : memref<8x2x128xf32, #tpu.memory_space<vmem>>, vector<1x2x128xf32>
    %5 = vector.shape_cast %4 : vector<1x2x128xf32> to vector<2x128xf32>
    %cst_4 = arith.constant dense<0.000000e+00> : vector<2x128xf32>
    %6 = tpu.matmul %1, %0, %cst_4 {dimension_numbers = #tpu.dot_dimension_numbers<[1], [0], [0], [1], [0, 0, 1, 1], [], []>} : vector<2x32xf32>, vector<32x128xf32>, vector<2x128xf32> -> vector<2x128xf32>
    %7 = arith.addf %5, %6 : vector<2x128xf32>
    %8 = vector.extract_strided_slice %7 {offsets = [0, 0], sizes = [2, 96], strides = [1, 1]} : vector<2x128xf32> to vector<2x96xf32>
    %9 = arith.negf %8 : vector<2x96xf32>
    %10 = math.exp %9 : vector<2x96xf32>
    %cst_5 = arith.constant 1.000000e+00 : f32
    %11 = vector.broadcast %cst_5 : f32 to vector<2x96xf32>
    %12 = arith.addf %11, %10 : vector<2x96xf32>
    %13 = arith.divf %11, %12 : vector<2x96xf32>
    %14 = vector.extract_strided_slice %13 {offsets = [0, 0], sizes = [2, 32], strides = [1, 1]} : vector<2x96xf32> to vector<2x32xf32>
    %15 = vector.extract_strided_slice %13 {offsets = [0, 32], sizes = [2, 32], strides = [1, 1]} : vector<2x96xf32> to vector<2x32xf32>
    %16 = vector.extract_strided_slice %13 {offsets = [0, 64], sizes = [2, 32], strides = [1, 1]} : vector<2x96xf32> to vector<2x32xf32>
    %17 = vector.extract_strided_slice %7 {offsets = [0, 96], sizes = [2, 32], strides = [1, 1]} : vector<2x128xf32> to vector<2x32xf32>
    %18 = math.tanh %17 : vector<2x32xf32>
    %19 = arith.mulf %15, %2 : vector<2x32xf32>
    %20 = arith.mulf %14, %18 : vector<2x32xf32>
    %21 = arith.addf %19, %20 : vector<2x32xf32>
    %22 = math.tanh %21 : vector<2x32xf32>
    %23 = arith.mulf %16, %22 : vector<2x32xf32>
    %c1_i32 = arith.constant 1 : i32
    %24 = arith.index_cast %c1_i32 : i32 to index
    %c0_6 = arith.constant 0 : index
    %c0_7 = arith.constant 0 : index
    %25 = vector.load %arg0[%24, %c0_6, %c0_7] : memref<8x2x128xf32, #tpu.memory_space<vmem>>, vector<1x2x128xf32>
    %26 = vector.shape_cast %25 : vector<1x2x128xf32> to vector<2x128xf32>
    %cst_8 = arith.constant dense<0.000000e+00> : vector<2x128xf32>
    %27 = tpu.matmul %23, %0, %cst_8 {dimension_numbers = #tpu.dot_dimension_numbers<[1], [0], [0], [1], [0, 0, 1, 1], [], []>} : vector<2x32xf32>, vector<32x128xf32>, vector<2x128xf32> -> vector<2x128xf32>
    %28 = arith.addf %26, %27 : vector<2x128xf32>
    %29 = vector.extract_strided_slice %28 {offsets = [0, 0], sizes = [2, 96], strides = [1, 1]} : vector<2x128xf32> to vector<2x96xf32>
    %30 = arith.negf %29 : vector<2x96xf32>
    %31 = math.exp %30 : vector<2x96xf32>
    %cst_9 = arith.constant 1.000000e+00 : f32
    %32 = vector.broadcast %cst_9 : f32 to vector<2x96xf32>
    %33 = arith.addf %32, %31 : vector<2x96xf32>
    %34 = arith.divf %32, %33 : vector<2x96xf32>
    %35 = vector.extract_strided_slice %34 {offsets = [0, 0], sizes = [2, 32], strides = [1, 1]} : vector<2x96xf32> to vector<2x32xf32>
    %36 = vector.extract_strided_slice %34 {offsets = [0, 32], sizes = [2, 32], strides = [1, 1]} : vector<2x96xf32> to vector<2x32xf32>
    %37 = vector.extract_strided_slice %34 {offsets = [0, 64], sizes = [2, 32], strides = [1, 1]} : vector<2x96xf32> to vector<2x32xf32>
    %38 = vector.extract_strided_slice %28 {offsets = [0, 96], sizes = [2, 32], strides = [1, 1]} : vector<2x128xf32> to vector<2x32xf32>
    %39 = math.tanh %38 : vector<2x32xf32>
    %40 = arith.mulf %36, %21 : vector<2x32xf32>
    %41 = arith.mulf %35, %39 : vector<2x32xf32>
    %42 = arith.addf %40, %41 : vector<2x32xf32>
    %43 = math.tanh %42 : vector<2x32xf32>
    %44 = arith.mulf %37, %43 : vector<2x32xf32>
    %c2_i32 = arith.constant 2 : i32
    %45 = arith.index_cast %c2_i32 : i32 to index
    %c0_10 = arith.constant 0 : index
    %c0_11 = arith.constant 0 : index
    %46 = vector.load %arg0[%45, %c0_10, %c0_11] : memref<8x2x128xf32, #tpu.memory_space<vmem>>, vector<1x2x128xf32>
    %47 = vector.shape_cast %46 : vector<1x2x128xf32> to vector<2x128xf32>
    %cst_12 = arith.constant dense<0.000000e+00> : vector<2x128xf32>
    %48 = tpu.matmul %44, %0, %cst_12 {dimension_numbers = #tpu.dot_dimension_numbers<[1], [0], [0], [1], [0, 0, 1, 1], [], []>} : vector<2x32xf32>, vector<32x128xf32>, vector<2x128xf32> -> vector<2x128xf32>
    %49 = arith.addf %47, %48 : vector<2x128xf32>
    %50 = vector.extract_strided_slice %49 {offsets = [0, 0], sizes = [2, 96], strides = [1, 1]} : vector<2x128xf32> to vector<2x96xf32>
    %51 = arith.negf %50 : vector<2x96xf32>
    %52 = math.exp %51 : vector<2x96xf32>
    %cst_13 = arith.constant 1.000000e+00 : f32
    %53 = vector.broadcast %cst_13 : f32 to vector<2x96xf32>
    %54 = arith.addf %53, %52 : vector<2x96xf32>
    %55 = arith.divf %53, %54 : vector<2x96xf32>
    %56 = vector.extract_strided_slice %55 {offsets = [0, 0], sizes = [2, 32], strides = [1, 1]} : vector<2x96xf32> to vector<2x32xf32>
    %57 = vector.extract_strided_slice %55 {offsets = [0, 32], sizes = [2, 32], strides = [1, 1]} : vector<2x96xf32> to vector<2x32xf32>
    %58 = vector.extract_strided_slice %55 {offsets = [0, 64], sizes = [2, 32], strides = [1, 1]} : vector<2x96xf32> to vector<2x32xf32>
    %59 = vector.extract_strided_slice %49 {offsets = [0, 96], sizes = [2, 32], strides = [1, 1]} : vector<2x128xf32> to vector<2x32xf32>
    %60 = math.tanh %59 : vector<2x32xf32>
    %61 = arith.mulf %57, %42 : vector<2x32xf32>
    %62 = arith.mulf %56, %60 : vector<2x32xf32>
    %63 = arith.addf %61, %62 : vector<2x32xf32>
    %64 = math.tanh %63 : vector<2x32xf32>
    %65 = arith.mulf %58, %64 : vector<2x32xf32>
    %c3_i32 = arith.constant 3 : i32
    %66 = arith.index_cast %c3_i32 : i32 to index
    %c0_14 = arith.constant 0 : index
    %c0_15 = arith.constant 0 : index
    %67 = vector.load %arg0[%66, %c0_14, %c0_15] : memref<8x2x128xf32, #tpu.memory_space<vmem>>, vector<1x2x128xf32>
    %68 = vector.shape_cast %67 : vector<1x2x128xf32> to vector<2x128xf32>
    %cst_16 = arith.constant dense<0.000000e+00> : vector<2x128xf32>
    %69 = tpu.matmul %65, %0, %cst_16 {dimension_numbers = #tpu.dot_dimension_numbers<[1], [0], [0], [1], [0, 0, 1, 1], [], []>} : vector<2x32xf32>, vector<32x128xf32>, vector<2x128xf32> -> vector<2x128xf32>
    %70 = arith.addf %68, %69 : vector<2x128xf32>
    %71 = vector.extract_strided_slice %70 {offsets = [0, 0], sizes = [2, 96], strides = [1, 1]} : vector<2x128xf32> to vector<2x96xf32>
    %72 = arith.negf %71 : vector<2x96xf32>
    %73 = math.exp %72 : vector<2x96xf32>
    %cst_17 = arith.constant 1.000000e+00 : f32
    %74 = vector.broadcast %cst_17 : f32 to vector<2x96xf32>
    %75 = arith.addf %74, %73 : vector<2x96xf32>
    %76 = arith.divf %74, %75 : vector<2x96xf32>
    %77 = vector.extract_strided_slice %76 {offsets = [0, 0], sizes = [2, 32], strides = [1, 1]} : vector<2x96xf32> to vector<2x32xf32>
    %78 = vector.extract_strided_slice %76 {offsets = [0, 32], sizes = [2, 32], strides = [1, 1]} : vector<2x96xf32> to vector<2x32xf32>
    %79 = vector.extract_strided_slice %76 {offsets = [0, 64], sizes = [2, 32], strides = [1, 1]} : vector<2x96xf32> to vector<2x32xf32>
    %80 = vector.extract_strided_slice %70 {offsets = [0, 96], sizes = [2, 32], strides = [1, 1]} : vector<2x128xf32> to vector<2x32xf32>
    %81 = math.tanh %80 : vector<2x32xf32>
    %82 = arith.mulf %78, %63 : vector<2x32xf32>
    %83 = arith.mulf %77, %81 : vector<2x32xf32>
    %84 = arith.addf %82, %83 : vector<2x32xf32>
    %85 = math.tanh %84 : vector<2x32xf32>
    %86 = arith.mulf %79, %85 : vector<2x32xf32>
    %c4_i32 = arith.constant 4 : i32
    %87 = arith.index_cast %c4_i32 : i32 to index
    %c0_18 = arith.constant 0 : index
    %c0_19 = arith.constant 0 : index
    %88 = vector.load %arg0[%87, %c0_18, %c0_19] : memref<8x2x128xf32, #tpu.memory_space<vmem>>, vector<1x2x128xf32>
    %89 = vector.shape_cast %88 : vector<1x2x128xf32> to vector<2x128xf32>
    %cst_20 = arith.constant dense<0.000000e+00> : vector<2x128xf32>
    %90 = tpu.matmul %86, %0, %cst_20 {dimension_numbers = #tpu.dot_dimension_numbers<[1], [0], [0], [1], [0, 0, 1, 1], [], []>} : vector<2x32xf32>, vector<32x128xf32>, vector<2x128xf32> -> vector<2x128xf32>
    %91 = arith.addf %89, %90 : vector<2x128xf32>
    %92 = vector.extract_strided_slice %91 {offsets = [0, 0], sizes = [2, 96], strides = [1, 1]} : vector<2x128xf32> to vector<2x96xf32>
    %93 = arith.negf %92 : vector<2x96xf32>
    %94 = math.exp %93 : vector<2x96xf32>
    %cst_21 = arith.constant 1.000000e+00 : f32
    %95 = vector.broadcast %cst_21 : f32 to vector<2x96xf32>
    %96 = arith.addf %95, %94 : vector<2x96xf32>
    %97 = arith.divf %95, %96 : vector<2x96xf32>
    %98 = vector.extract_strided_slice %97 {offsets = [0, 0], sizes = [2, 32], strides = [1, 1]} : vector<2x96xf32> to vector<2x32xf32>
    %99 = vector.extract_strided_slice %97 {offsets = [0, 32], sizes = [2, 32], strides = [1, 1]} : vector<2x96xf32> to vector<2x32xf32>
    %100 = vector.extract_strided_slice %97 {offsets = [0, 64], sizes = [2, 32], strides = [1, 1]} : vector<2x96xf32> to vector<2x32xf32>
    %101 = vector.extract_strided_slice %91 {offsets = [0, 96], sizes = [2, 32], strides = [1, 1]} : vector<2x128xf32> to vector<2x32xf32>
    %102 = math.tanh %101 : vector<2x32xf32>
    %103 = arith.mulf %99, %84 : vector<2x32xf32>
    %104 = arith.mulf %98, %102 : vector<2x32xf32>
    %105 = arith.addf %103, %104 : vector<2x32xf32>
    %106 = math.tanh %105 : vector<2x32xf32>
    %107 = arith.mulf %100, %106 : vector<2x32xf32>
    %c5_i32 = arith.constant 5 : i32
    %108 = arith.index_cast %c5_i32 : i32 to index
    %c0_22 = arith.constant 0 : index
    %c0_23 = arith.constant 0 : index
    %109 = vector.load %arg0[%108, %c0_22, %c0_23] : memref<8x2x128xf32, #tpu.memory_space<vmem>>, vector<1x2x128xf32>
    %110 = vector.shape_cast %109 : vector<1x2x128xf32> to vector<2x128xf32>
    %cst_24 = arith.constant dense<0.000000e+00> : vector<2x128xf32>
    %111 = tpu.matmul %107, %0, %cst_24 {dimension_numbers = #tpu.dot_dimension_numbers<[1], [0], [0], [1], [0, 0, 1, 1], [], []>} : vector<2x32xf32>, vector<32x128xf32>, vector<2x128xf32> -> vector<2x128xf32>
    %112 = arith.addf %110, %111 : vector<2x128xf32>
    %113 = vector.extract_strided_slice %112 {offsets = [0, 0], sizes = [2, 96], strides = [1, 1]} : vector<2x128xf32> to vector<2x96xf32>
    %114 = arith.negf %113 : vector<2x96xf32>
    %115 = math.exp %114 : vector<2x96xf32>
    %cst_25 = arith.constant 1.000000e+00 : f32
    %116 = vector.broadcast %cst_25 : f32 to vector<2x96xf32>
    %117 = arith.addf %116, %115 : vector<2x96xf32>
    %118 = arith.divf %116, %117 : vector<2x96xf32>
    %119 = vector.extract_strided_slice %118 {offsets = [0, 0], sizes = [2, 32], strides = [1, 1]} : vector<2x96xf32> to vector<2x32xf32>
    %120 = vector.extract_strided_slice %118 {offsets = [0, 32], sizes = [2, 32], strides = [1, 1]} : vector<2x96xf32> to vector<2x32xf32>
    %121 = vector.extract_strided_slice %118 {offsets = [0, 64], sizes = [2, 32], strides = [1, 1]} : vector<2x96xf32> to vector<2x32xf32>
    %122 = vector.extract_strided_slice %112 {offsets = [0, 96], sizes = [2, 32], strides = [1, 1]} : vector<2x128xf32> to vector<2x32xf32>
    %123 = math.tanh %122 : vector<2x32xf32>
    %124 = arith.mulf %120, %105 : vector<2x32xf32>
    %125 = arith.mulf %119, %123 : vector<2x32xf32>
    %126 = arith.addf %124, %125 : vector<2x32xf32>
    %127 = math.tanh %126 : vector<2x32xf32>
    %128 = arith.mulf %121, %127 : vector<2x32xf32>
    %c6_i32 = arith.constant 6 : i32
    %129 = arith.index_cast %c6_i32 : i32 to index
    %c0_26 = arith.constant 0 : index
    %c0_27 = arith.constant 0 : index
    %130 = vector.load %arg0[%129, %c0_26, %c0_27] : memref<8x2x128xf32, #tpu.memory_space<vmem>>, vector<1x2x128xf32>
    %131 = vector.shape_cast %130 : vector<1x2x128xf32> to vector<2x128xf32>
    %cst_28 = arith.constant dense<0.000000e+00> : vector<2x128xf32>
    %132 = tpu.matmul %128, %0, %cst_28 {dimension_numbers = #tpu.dot_dimension_numbers<[1], [0], [0], [1], [0, 0, 1, 1], [], []>} : vector<2x32xf32>, vector<32x128xf32>, vector<2x128xf32> -> vector<2x128xf32>
    %133 = arith.addf %131, %132 : vector<2x128xf32>
    %134 = vector.extract_strided_slice %133 {offsets = [0, 0], sizes = [2, 96], strides = [1, 1]} : vector<2x128xf32> to vector<2x96xf32>
    %135 = arith.negf %134 : vector<2x96xf32>
    %136 = math.exp %135 : vector<2x96xf32>
    %cst_29 = arith.constant 1.000000e+00 : f32
    %137 = vector.broadcast %cst_29 : f32 to vector<2x96xf32>
    %138 = arith.addf %137, %136 : vector<2x96xf32>
    %139 = arith.divf %137, %138 : vector<2x96xf32>
    %140 = vector.extract_strided_slice %139 {offsets = [0, 0], sizes = [2, 32], strides = [1, 1]} : vector<2x96xf32> to vector<2x32xf32>
    %141 = vector.extract_strided_slice %139 {offsets = [0, 32], sizes = [2, 32], strides = [1, 1]} : vector<2x96xf32> to vector<2x32xf32>
    %142 = vector.extract_strided_slice %139 {offsets = [0, 64], sizes = [2, 32], strides = [1, 1]} : vector<2x96xf32> to vector<2x32xf32>
    %143 = vector.extract_strided_slice %133 {offsets = [0, 96], sizes = [2, 32], strides = [1, 1]} : vector<2x128xf32> to vector<2x32xf32>
    %144 = math.tanh %143 : vector<2x32xf32>
    %145 = arith.mulf %141, %126 : vector<2x32xf32>
    %146 = arith.mulf %140, %144 : vector<2x32xf32>
    %147 = arith.addf %145, %146 : vector<2x32xf32>
    %148 = math.tanh %147 : vector<2x32xf32>
    %149 = arith.mulf %142, %148 : vector<2x32xf32>
    %c7_i32 = arith.constant 7 : i32
    %150 = arith.index_cast %c7_i32 : i32 to index
    %c0_30 = arith.constant 0 : index
    %c0_31 = arith.constant 0 : index
    %151 = vector.load %arg0[%150, %c0_30, %c0_31] : memref<8x2x128xf32, #tpu.memory_space<vmem>>, vector<1x2x128xf32>
    %152 = vector.shape_cast %151 : vector<1x2x128xf32> to vector<2x128xf32>
    %cst_32 = arith.constant dense<0.000000e+00> : vector<2x128xf32>
    %153 = tpu.matmul %149, %0, %cst_32 {dimension_numbers = #tpu.dot_dimension_numbers<[1], [0], [0], [1], [0, 0, 1, 1], [], []>} : vector<2x32xf32>, vector<32x128xf32>, vector<2x128xf32> -> vector<2x128xf32>
    %154 = arith.addf %152, %153 : vector<2x128xf32>
    %155 = vector.extract_strided_slice %154 {offsets = [0, 0], sizes = [2, 96], strides = [1, 1]} : vector<2x128xf32> to vector<2x96xf32>
    %156 = arith.negf %155 : vector<2x96xf32>
    %157 = math.exp %156 : vector<2x96xf32>
    %cst_33 = arith.constant 1.000000e+00 : f32
    %158 = vector.broadcast %cst_33 : f32 to vector<2x96xf32>
    %159 = arith.addf %158, %157 : vector<2x96xf32>
    %160 = arith.divf %158, %159 : vector<2x96xf32>
    %161 = vector.extract_strided_slice %160 {offsets = [0, 0], sizes = [2, 32], strides = [1, 1]} : vector<2x96xf32> to vector<2x32xf32>
    %162 = vector.extract_strided_slice %160 {offsets = [0, 32], sizes = [2, 32], strides = [1, 1]} : vector<2x96xf32> to vector<2x32xf32>
    %163 = vector.extract_strided_slice %160 {offsets = [0, 64], sizes = [2, 32], strides = [1, 1]} : vector<2x96xf32> to vector<2x32xf32>
    %164 = vector.extract_strided_slice %154 {offsets = [0, 96], sizes = [2, 32], strides = [1, 1]} : vector<2x128xf32> to vector<2x32xf32>
    %165 = math.tanh %164 : vector<2x32xf32>
    %166 = arith.mulf %162, %147 : vector<2x32xf32>
    %167 = arith.mulf %161, %165 : vector<2x32xf32>
    %168 = arith.addf %166, %167 : vector<2x32xf32>
    %169 = math.tanh %168 : vector<2x32xf32>
    %170 = arith.mulf %163, %169 : vector<2x32xf32>
    %c8_i32 = arith.constant 8 : i32
    %c0_34 = arith.constant 0 : index
    %c0_35 = arith.constant 0 : index
    %171 = vector.load %arg2[%c0_34, %c0_35] : memref<32x128xf32, #tpu.memory_space<vmem>>, vector<32x128xf32>
    %cst_36 = arith.constant dense<0.000000e+00> : vector<2x128xf32>
    %172 = tpu.matmul %170, %171, %cst_36 {dimension_numbers = #tpu.dot_dimension_numbers<[1], [0], [0], [1], [0, 0, 1, 1], [], []>} : vector<2x32xf32>, vector<32x128xf32>, vector<2x128xf32> -> vector<2x128xf32>
    %c0_37 = arith.constant 0 : index
    %c0_38 = arith.constant 0 : index
    %173 = vector.load %arg3[%c0_37, %c0_38] : memref<1x128xf32, #tpu.memory_space<vmem>>, vector<1x128xf32>
    %174 = vector.broadcast %173 : vector<1x128xf32> to vector<2x128xf32>
    %175 = arith.addf %172, %174 : vector<2x128xf32>
    %c0_39 = arith.constant 0 : index
    %c0_40 = arith.constant 0 : index
    %176 = vector.load %arg4[%c0_39, %c0_40] : memref<2x128xf32, #tpu.memory_space<vmem>>, vector<2x128xf32>
    tpu.vector_store %arg4[%c0_39, %c0_40], %175 {strides = array<i32>} : memref<2x128xf32, #tpu.memory_space<vmem>>, vector<2x128xf32>,
    return
  }
}

</mosaic_0001>

<bundles_post_ra>
// kernel: tpu_custom_call.1
= control target key start
LH: loop header
LB: loop body
LE: loop exit
PB: predicated region body
PF: predicated region fallthrough
CT: control target
= control target key end

     0   :  { %9 = vsyncpa [#allocation3], 0  ;;  %s924_s0 = inlined_call_operand.hbm [shape: f32[8,2,128], index: 0, kind: input, shape index: {}]   ;;  %s925_s1 = inlined_call_operand.hbm [shape: f32[32,128], index: 1, kind: input, shape index: {}]   ;;  %s926_s2 = inlined_call_operand.hbm [shape: f32[32,128], index: 2, kind: input, shape index: {}]   ;;  %s927_s3 = inlined_call_operand.vmem [shape: f32[1,128], index: 3, kind: input, shape index: {}]   ;;  %s928_s4 = inlined_call_operand.hbm [shape: f32[2,128], index: 4, kind: output, shape index: {}]  }
   0x1   :  { %10 = vsyncpa [#allocation6], 0  ;;  %s29_s17 = sshll.u32 %s925_s1, 4  ;;  %s30_s17 = int_to_ptr.hbm [resolvable:$true] %s29_s17 }
   0x2   :  { %11 = vsyncpa [#allocation4], 0  ;;  %s832_s18 = smov [#allocation5]   ;;  %s16_s22 = sshll.u32 %s924_s0, 4  ;;  %s17_s22 = int_to_ptr.hbm [resolvable:$true] %s16_s22 }
   0x3   :  { %s31_s19 = sshll.u32 %s832_s18, 4  ;;  %s833_s23 = smov 128   ;;  %s32_s19 = int_to_ptr.vmem [resolvable:$true] %s31_s19 }
   0x4   :  { %s834_s24 = smov 8   ;;  %s835_s25 = smov [#allocation2]  }
   0x5   :  { %37 = dma.hbm_to_vmem [thread:$0]  %s30_s17, 512, %s32_s19, [#allocation6], %s833_s23, %s833_s23, %s834_s24  }
   0x6   :  { %s18_s26 = sshll.u32 %s835_s25, 4  ;;  %s836_s27 = smov 32   ;;  %s19_s26 = int_to_ptr.vmem [resolvable:$true] %s18_s26 }
   0x7   :  { %s837_s28 = smov 2   ;;  %s42_s30 = sshll.u32 %s926_s2, 4  ;;  %s43_s30 = int_to_ptr.hbm [resolvable:$true] %s42_s30 }
   0x8   :  { %24 = dma.hbm_to_vmem [thread:$0]  %s17_s22, 256, %s19_s26, [#allocation3], %s836_s27, %s836_s27, %s837_s28  }
   0x9   :  { %s838_s5 = smov [#allocation7]  }
   0xa   :  { %s44_s6 = sshll.u32 %s838_s5, 4  ;;  %s45_s6 = int_to_ptr.vmem [resolvable:$true] %s44_s6 }
   0xb   :  { %50 = dma.hbm_to_vmem [thread:$0]  %s43_s30, 512, %s45_s6, [#allocation6], %s833_s23, %s833_s23, %s834_s24  }
   0xc   :  { %826 = dma.done.wait [#allocation3], 256  }
   0xd   :  { %827 = vsyncadd [#allocation3], 4294967040 }
   0xe   :  { %828 = dma.done.wait [#allocation6], 1024  }
   0xf   :  { %829 = vsyncadd [#allocation6], 4294966272  ;;  %v68_v0 = vld [vmem:[#allocation5 + $0x18] sm:$0xff]  ;;  %v67_v1 = vld [vmem:[#allocation5 + $0x10] sm:$0xff]  ;;  %v839_v4 = vmov 0.0   ;;  %s840_s0 = smov 64  }
  0x10   :  { %86 = vmatpush.msra.mxu0 %v68_v0  ;;  %151 = vmatpush.msra.mxu1 %v68_v0  ;;  %v66_v2 = vld [vmem:[#allocation5 + $0x8] sm:$0xff]  ;;  %v65_v3 = vld [vmem:[#allocation5] sm:$0xff]  ;;  %v69_v5 = vld [vmem:[#allocation2] sm:$0x3]  ;;  %vm70_vm4 = vcmask 261120   ;;  %s841_s8 = smov [#allocation8]  }
  0x11   :  { %216 = vmatpush.msra.mxu2 %v68_v0  ;;  %281 = vmatpush.msra.mxu3 %v68_v0  ;;  %v133_v31 = vld [vmem:[#allocation2 + $0x2] sm:$0x3]  ;;  %v198_v57 = vld [vmem:[#allocation2 + $0x4] sm:$0x3]  ;;  %s626_s9 = sshll.u32 %s841_s8, 4  ;;  %s628_s12 = sshll.u32 %s928_s4, 4  ;;  %s627_s9 = int_to_ptr.vmem [resolvable:$true] %s626_s9  ;;  %s629_s12 = int_to_ptr.hbm [resolvable:$true] %s628_s12 }
  0x12   :  { %87 = vmatpush.msra.mxu0 %v67_v1  ;;  %152 = vmatpush.msra.mxu1 %v67_v1 }
  0x13   :  { %217 = vmatpush.msra.mxu2 %v67_v1  ;;  %282 = vmatpush.msra.mxu3 %v67_v1 }
  0x14   :  { %88 = vmatpush.msra.mxu0 %v66_v2  ;;  %153 = vmatpush.msra.mxu1 %v66_v2 }
  0x15   :  { %218 = vmatpush.msra.mxu2 %v66_v2  ;;  %283 = vmatpush.msra.mxu3 %v66_v2 }
  0x16   :  { %89 = vmatpush.msra.mxu0 %v65_v3  ;;  %154 = vmatpush.msra.mxu1 %v65_v3 }
  0x17   :  { %90 = vmatmul.f32.vlgmr.msra.gmra.mxu0 %v839_v4  ;;  %219 = vmatpush.msra.mxu2 %v65_v3 }
  0x18   :  { %284 = vmatpush.msra.mxu3 %v65_v3  ;;  %346 = vmatpush.msrb.mxu0 %v68_v0 }
  0x19   :  { %411 = vmatpush.msrb.mxu1 %v68_v0  ;;  %476 = vmatpush.msrb.mxu2 %v68_v0 }
  0x1a   :  { %347 = vmatpush.msrb.mxu0 %v67_v1  ;;  %541 = vmatpush.msrb.mxu3 %v68_v0 }
  0x1b   :  { %412 = vmatpush.msrb.mxu1 %v67_v1  ;;  %477 = vmatpush.msrb.mxu2 %v67_v1 }
  0x1c   :  { %348 = vmatpush.msrb.mxu0 %v66_v2  ;;  %542 = vmatpush.msrb.mxu3 %v67_v1 }
  0x1d   :  { %413 = vmatpush.msrb.mxu1 %v66_v2  ;;  %478 = vmatpush.msrb.mxu2 %v66_v2 }
  0x1e   :  { %349 = vmatpush.msrb.mxu0 %v65_v3  ;;  %543 = vmatpush.msrb.mxu3 %v66_v2 }
  0x1f   :  { %414 = vmatpush.msrb.mxu1 %v65_v3  ;;  %479 = vmatpush.msrb.mxu2 %v65_v3 }
  0x20   :  { %544 = vmatpush.msrb.mxu3 %v65_v3 }
  0x94   :  { %v91_v6 = vpop.f32.mrf.mxu0 }
  0x95   :  { %v94_v7 = vadd.f32 %v91_v6, %v69_v5 }
  0x97   :  { %666 = vtanh.f32 %v94_v7  ;;  %v639_v9 = vmul.f32 -1.442695, %v94_v7 }
  0x99   :  { %668 = vpow2.f32 %v639_v9 }
  0x9d   :  { %v667_v8 = vpop.eup %666 }
  0x9e   :  { %117 = vrot.lane.b32.xlu0 %v667_v8, %s836_s27 }
  0x9f   :  { %v669_v10 = vpop.eup %668 }
  0xa0   :  { %v98_v11 = vadd.f32 1.0, %v669_v10 }
  0xa2   :  { %670 = vrcp.f32 %v98_v11  ;;  %v110_v17 = vand.u32 2147483648, %v98_v11  ;;  %vm104_vm1 = vweird.f32 %v98_v11  ;;  %v108_v18 = vand.u32 2147483647, %v98_v11 }
  0xa4   :  { %v111_v20 = vor.u32 1.1754944e-38, %v110_v17  ;;  %vm109_vm3 = vcmp.eq.f32.partialorder %v108_v18, 8.507059e+37 }
  0xa8   :  { %v671_v12 = vpop.eup %670 }
  0xa9   :  { %v100_v13 = vmul.f32 %v671_v12, %v98_v11  ;;  %vm105_vm0 = vweird.f32 %v671_v12 }
  0xaa   :  { %vm106_vm2 = vmor %vm104_vm1, %vm105_vm0 }
  0xab   :  { %v101_v14 = vsub.f32 1.0, %v100_v13 }
  0xad   :  { %v102_v15 = vmul.f32 %v671_v12, %v101_v14 }
  0xaf   :  { %v103_v16 = vadd.f32 %v671_v12, %v102_v15 }
  0xb1   :  { %v107_v19 = vsel %vm106_vm2, %v671_v12, %v103_v16 }
  0xb2   :  { %v112_v22 = vsel %vm109_vm3, %v111_v20, %v107_v19  ;;  %v263_v19 = vld [vmem:[#allocation2 + $0x6] sm:$0x3] }
  0xb3   :  { %v115_v24 = vmul.f32 0.0, %v112_v22 }
 0x110   :  { %v118_v21 = vpop.permute.xlu0 %117 }
 0x111   :  { %v120_v23 = vmul.f32 %v118_v21, %v112_v22 }
 0x113   :  { %122 = vrot.lane.b32.xlu0 %v120_v23, %s836_s27 }
 0x185   :  { %v123_v25 = vpop.permute.xlu0 %122 }
 0x186   :  { %v125_v26 = vadd.f32 %v123_v25, %v115_v24 }
 0x188   :  { %672 = vtanh.f32 %v125_v26 }
 0x18e   :  { %v673_v27 = vpop.eup %672 }
 0x18f   :  { %128 = vrot.lane.b32.xlu1 %v673_v27, %s836_s27 }
 0x201   :  { %v129_v28 = vpop.permute.xlu1 %128 }
 0x202   :  { %v131_v29 = vmul.f32 %v129_v28, %v112_v22 }
 0x204   :  { %135 = vrot.lane.b32.xlu1 %v131_v29, %s840_s0 }
 0x276   :  { %v136_v30 = vpop.permute.xlu1 %135 }
 0x277   :  { %640 = vmatmul.msk.f32.vlgmr.msra.gmra.mxu1 %vm70_vm4, %v136_v30 }
 0x2f4   :  { %v156_v32 = vpop.f32.mrf.mxu1 }
 0x2f5   :  { %v159_v33 = vadd.f32 %v156_v32, %v133_v31 }
 0x2f7   :  { %674 = vtanh.f32 %v159_v33  ;;  %v641_v35 = vmul.f32 -1.442695, %v159_v33 }
 0x2f9   :  { %676 = vpow2.f32 %v641_v35 }
 0x2fd   :  { %v675_v34 = vpop.eup %674 }
 0x2fe   :  { %182 = vrot.lane.b32.xlu2 %v675_v34, %s836_s27 }
 0x2ff   :  { %v677_v36 = vpop.eup %676 }
 0x300   :  { %v163_v37 = vadd.f32 1.0, %v677_v36 }
 0x302   :  { %678 = vrcp.f32 %v163_v37  ;;  %v175_v43 = vand.u32 2147483648, %v163_v37  ;;  %vm169_vm6 = vweird.f32 %v163_v37  ;;  %v173_v44 = vand.u32 2147483647, %v163_v37 }
 0x304   :  { %v176_v46 = vor.u32 1.1754944e-38, %v175_v43  ;;  %vm174_vm8 = vcmp.eq.f32.partialorder %v173_v44, 8.507059e+37 }
 0x308   :  { %v679_v38 = vpop.eup %678 }
 0x309   :  { %v165_v39 = vmul.f32 %v679_v38, %v163_v37  ;;  %vm170_vm5 = vweird.f32 %v679_v38 }
 0x30a   :  { %vm171_vm7 = vmor %vm169_vm6, %vm170_vm5 }
 0x30b   :  { %v166_v40 = vsub.f32 1.0, %v165_v39 }
 0x30d   :  { %v167_v41 = vmul.f32 %v679_v38, %v166_v40 }
 0x30f   :  { %v168_v42 = vadd.f32 %v679_v38, %v167_v41 }
 0x311   :  { %v172_v45 = vsel %vm171_vm7, %v679_v38, %v168_v42 }
 0x312   :  { %v177_v48 = vsel %vm174_vm8, %v176_v46, %v172_v45  ;;  %v328_v45 = vld [vmem:[#allocation2 + $0x8] sm:$0x3] }
 0x313   :  { %v180_v50 = vmul.f32 %v177_v48, %v125_v26 }
 0x358   :  { %v183_v47 = vpop.permute.xlu2 %182 }
 0x359   :  { %v185_v49 = vmul.f32 %v183_v47, %v177_v48 }
 0x35b   :  { %187 = vrot.lane.b32.xlu2 %v185_v49, %s836_s27 }
 0x3b5   :  { %v188_v51 = vpop.permute.xlu2 %187 }
 0x3b6   :  { %v190_v52 = vadd.f32 %v188_v51, %v180_v50 }
 0x3b8   :  { %680 = vtanh.f32 %v190_v52 }
 0x3be   :  { %v681_v53 = vpop.eup %680 }
 0x3bf   :  { %193 = vrot.lane.b32.xlu0 %v681_v53, %s836_s27 }
 0x431   :  { %v194_v54 = vpop.permute.xlu0 %193 }
 0x432   :  { %v196_v55 = vmul.f32 %v194_v54, %v177_v48 }
 0x434   :  { %200 = vrot.lane.b32.xlu1 %v196_v55, %s840_s0 }
 0x4a6   :  { %v201_v56 = vpop.permute.xlu1 %200 }
 0x4a7   :  { %642 = vmatmul.msk.f32.vlgmr.msra.gmra.mxu2 %vm70_vm4, %v201_v56 }
 0x52a   :  { %v221_v58 = vpop.f32.mrf.mxu2 }
 0x52b   :  { %v224_v59 = vadd.f32 %v221_v58, %v198_v57 }
 0x52d   :  { %682 = vtanh.f32 %v224_v59  ;;  %v643_v61 = vmul.f32 -1.442695, %v224_v59 }
 0x52f   :  { %684 = vpow2.f32 %v643_v61 }
 0x533   :  { %v683_v60 = vpop.eup %682 }
 0x534   :  { %247 = vrot.lane.b32.xlu2 %v683_v60, %s836_s27 }
 0x535   :  { %v685_v62 = vpop.eup %684 }
 0x536   :  { %v228_v63 = vadd.f32 1.0, %v685_v62 }
 0x538   :  { %686 = vrcp.f32 %v228_v63  ;;  %v240_v5 = vand.u32 2147483648, %v228_v63  ;;  %vm234_vm10 = vweird.f32 %v228_v63  ;;  %v238_v6 = vand.u32 2147483647, %v228_v63 }
 0x53a   :  { %v241_v8 = vor.u32 1.1754944e-38, %v240_v5  ;;  %vm239_vm12 = vcmp.eq.f32.partialorder %v238_v6, 8.507059e+37 }
 0x53e   :  { %v687_v0 = vpop.eup %686 }
 0x53f   :  { %v230_v1 = vmul.f32 %v687_v0, %v228_v63  ;;  %vm235_vm9 = vweird.f32 %v687_v0 }
 0x540   :  { %vm236_vm11 = vmor %vm234_vm10, %vm235_vm9 }
 0x541   :  { %v231_v2 = vsub.f32 1.0, %v230_v1 }
 0x543   :  { %v232_v3 = vmul.f32 %v687_v0, %v231_v2 }
 0x545   :  { %v233_v4 = vadd.f32 %v687_v0, %v232_v3 }
 0x547   :  { %v237_v7 = vsel %vm236_vm11, %v687_v0, %v233_v4 }
 0x548   :  { %v242_v10 = vsel %vm239_vm12, %v241_v8, %v237_v7  ;;  %v393_v7 = vld [vmem:[#allocation2 + $0xa] sm:$0x3] }
 0x549   :  { %v245_v12 = vmul.f32 %v242_v10, %v190_v52 }
 0x58e   :  { %v248_v9 = vpop.permute.xlu2 %247 }
 0x58f   :  { %v250_v11 = vmul.f32 %v248_v9, %v242_v10 }
 0x591   :  { %252 = vrot.lane.b32.xlu0 %v250_v11, %s836_s27 }
 0x603   :  { %v253_v13 = vpop.permute.xlu0 %252 }
 0x604   :  { %v255_v14 = vadd.f32 %v253_v13, %v245_v12 }
 0x606   :  { %688 = vtanh.f32 %v255_v14 }
 0x60c   :  { %v689_v15 = vpop.eup %688 }
 0x60d   :  { %258 = vrot.lane.b32.xlu1 %v689_v15, %s836_s27 }
 0x67f   :  { %v259_v16 = vpop.permute.xlu1 %258 }
 0x680   :  { %v261_v17 = vmul.f32 %v259_v16, %v242_v10 }
 0x682   :  { %265 = vrot.lane.b32.xlu2 %v261_v17, %s840_s0 }
 0x6dc   :  { %v266_v18 = vpop.permute.xlu2 %265 }
 0x6dd   :  { %644 = vmatmul.msk.f32.vlgmr.msra.gmra.mxu3 %vm70_vm4, %v266_v18 }
 0x760   :  { %v286_v20 = vpop.f32.mrf.mxu3 }
 0x761   :  { %v289_v21 = vadd.f32 %v286_v20, %v263_v19 }
 0x763   :  { %690 = vtanh.f32 %v289_v21  ;;  %v645_v23 = vmul.f32 -1.442695, %v289_v21 }
 0x765   :  { %692 = vpow2.f32 %v645_v23 }
 0x769   :  { %v691_v22 = vpop.eup %690 }
 0x76a   :  { %312 = vrot.lane.b32.xlu0 %v691_v22, %s836_s27 }
 0x76b   :  { %v693_v24 = vpop.eup %692 }
 0x76c   :  { %v293_v25 = vadd.f32 1.0, %v693_v24 }
 0x76e   :  { %694 = vrcp.f32 %v293_v25  ;;  %v305_v31 = vand.u32 2147483648, %v293_v25  ;;  %vm299_vm14 = vweird.f32 %v293_v25  ;;  %v303_v32 = vand.u32 2147483647, %v293_v25 }
 0x770   :  { %v306_v34 = vor.u32 1.1754944e-38, %v305_v31  ;;  %vm304_vm0 = vcmp.eq.f32.partialorder %v303_v32, 8.507059e+37 }
 0x774   :  { %v695_v26 = vpop.eup %694 }
 0x775   :  { %v295_v27 = vmul.f32 %v695_v26, %v293_v25  ;;  %vm300_vm13 = vweird.f32 %v695_v26 }
 0x776   :  { %vm301_vm15 = vmor %vm299_vm14, %vm300_vm13 }
 0x777   :  { %v296_v28 = vsub.f32 1.0, %v295_v27 }
 0x779   :  { %v297_v29 = vmul.f32 %v695_v26, %v296_v28 }
 0x77b   :  { %v298_v30 = vadd.f32 %v695_v26, %v297_v29 }
 0x77d   :  { %v302_v33 = vsel %vm301_vm15, %v695_v26, %v298_v30 }
 0x77e   :  { %v307_v36 = vsel %vm304_vm0, %v306_v34, %v302_v33  ;;  %v458_v33 = vld [vmem:[#allocation2 + $0xc] sm:$0x3] }
 0x77f   :  { %v310_v38 = vmul.f32 %v307_v36, %v255_v14 }
 0x7dc   :  { %v313_v35 = vpop.permute.xlu0 %312 }
 0x7dd   :  { %v315_v37 = vmul.f32 %v313_v35, %v307_v36 }
 0x7df   :  { %317 = vrot.lane.b32.xlu1 %v315_v37, %s836_s27 }
 0x851   :  { %v318_v39 = vpop.permute.xlu1 %317 }
 0x852   :  { %v320_v40 = vadd.f32 %v318_v39, %v310_v38 }
 0x854   :  { %696 = vtanh.f32 %v320_v40 }
 0x85a   :  { %v697_v41 = vpop.eup %696 }
 0x85b   :  { %323 = vrot.lane.b32.xlu2 %v697_v41, %s836_s27 }
 0x8b5   :  { %v324_v42 = vpop.permute.xlu2 %323 }
 0x8b6   :  { %v326_v43 = vmul.f32 %v324_v42, %v307_v36 }
 0x8b8   :  { %330 = vrot.lane.b32.xlu0 %v326_v43, %s840_s0 }
 0x92a   :  { %v331_v44 = vpop.permute.xlu0 %330 }
 0x92b   :  { %646 = vmatmul.msk.f32.vlgmr.msrb.gmra.mxu0 %vm70_vm4, %v331_v44 }
 0x9a8   :  { %v351_v46 = vpop.f32.mrf.mxu0 }
 0x9a9   :  { %v354_v47 = vadd.f32 %v351_v46, %v328_v45 }
 0x9ab   :  { %698 = vtanh.f32 %v354_v47  ;;  %v647_v49 = vmul.f32 -1.442695, %v354_v47 }
 0x9ad   :  { %700 = vpow2.f32 %v647_v49 }
 0x9b1   :  { %v699_v48 = vpop.eup %698 }
 0x9b2   :  { %377 = vrot.lane.b32.xlu1 %v699_v48, %s836_s27 }
 0x9b3   :  { %v701_v50 = vpop.eup %700 }
 0x9b4   :  { %v358_v51 = vadd.f32 1.0, %v701_v50 }
 0x9b6   :  { %702 = vrcp.f32 %v358_v51  ;;  %v370_v57 = vand.u32 2147483648, %v358_v51  ;;  %vm364_vm2 = vweird.f32 %v358_v51  ;;  %v368_v58 = vand.u32 2147483647, %v358_v51 }
 0x9b8   :  { %v371_v60 = vor.u32 1.1754944e-38, %v370_v57  ;;  %vm369_vm5 = vcmp.eq.f32.partialorder %v368_v58, 8.507059e+37 }
 0x9bc   :  { %v703_v52 = vpop.eup %702 }
 0x9bd   :  { %v360_v53 = vmul.f32 %v703_v52, %v358_v51  ;;  %vm365_vm1 = vweird.f32 %v703_v52 }
 0x9be   :  { %vm366_vm3 = vmor %vm364_vm2, %vm365_vm1 }
 0x9bf   :  { %v361_v54 = vsub.f32 1.0, %v360_v53 }
 0x9c1   :  { %v362_v55 = vmul.f32 %v703_v52, %v361_v54 }
 0x9c3   :  { %v363_v56 = vadd.f32 %v703_v52, %v362_v55 }
 0x9c5   :  { %v367_v59 = vsel %vm366_vm3, %v703_v52, %v363_v56 }
 0x9c6   :  { %v372_v62 = vsel %vm369_vm5, %v371_v60, %v367_v59  ;;  %v523_v59 = vld [vmem:[#allocation2 + $0xe] sm:$0x3] }
 0x9c7   :  { %v375_v0 = vmul.f32 %v372_v62, %v320_v40 }
 0xa24   :  { %v378_v61 = vpop.permute.xlu1 %377 }
 0xa25   :  { %v380_v63 = vmul.f32 %v378_v61, %v372_v62 }
 0xa27   :  { %382 = vrot.lane.b32.xlu2 %v380_v63, %s836_s27 }
 0xa81   :  { %v383_v1 = vpop.permute.xlu2 %382 }
 0xa82   :  { %v385_v2 = vadd.f32 %v383_v1, %v375_v0 }
 0xa84   :  { %704 = vtanh.f32 %v385_v2 }
 0xa8a   :  { %v705_v3 = vpop.eup %704 }
 0xa8b   :  { %388 = vrot.lane.b32.xlu0 %v705_v3, %s836_s27 }
 0xafd   :  { %v389_v4 = vpop.permute.xlu0 %388 }
 0xafe   :  { %v391_v5 = vmul.f32 %v389_v4, %v372_v62 }
 0xb00   :  { %395 = vrot.lane.b32.xlu1 %v391_v5, %s840_s0 }
 0xb72   :  { %v396_v6 = vpop.permute.xlu1 %395 }
 0xb73   :  { %648 = vmatmul.msk.f32.vlgmr.msrb.gmra.mxu1 %vm70_vm4, %v396_v6 }
 0xbf0   :  { %v416_v8 = vpop.f32.mrf.mxu1 }
 0xbf1   :  { %v419_v9 = vadd.f32 %v416_v8, %v393_v7 }
 0xbf3   :  { %706 = vtanh.f32 %v419_v9  ;;  %v649_v11 = vmul.f32 -1.442695, %v419_v9 }
 0xbf5   :  { %708 = vpow2.f32 %v649_v11 }
 0xbf9   :  { %v707_v10 = vpop.eup %706 }
 0xbfa   :  { %442 = vrot.lane.b32.xlu2 %v707_v10, %s836_s27 }
 0xbfb   :  { %v709_v12 = vpop.eup %708 }
 0xbfc   :  { %v423_v13 = vadd.f32 1.0, %v709_v12 }
 0xbfe   :  { %710 = vrcp.f32 %v423_v13  ;;  %v435_v19 = vand.u32 2147483648, %v423_v13  ;;  %vm429_vm7 = vweird.f32 %v423_v13  ;;  %v433_v20 = vand.u32 2147483647, %v423_v13 }
 0xc00   :  { %v436_v22 = vor.u32 1.1754944e-38, %v435_v19  ;;  %vm434_vm9 = vcmp.eq.f32.partialorder %v433_v20, 8.507059e+37  ;;  %v589_v19 = vld [vmem:[#allocation7 + $0x10] sm:$0xff]  ;;  %v588_v20 = vld [vmem:[#allocation7 + $0x8] sm:$0xff] }
 0xc04   :  { %v711_v14 = vpop.eup %710 }
 0xc05   :  { %v425_v15 = vmul.f32 %v711_v14, %v423_v13  ;;  %vm430_vm6 = vweird.f32 %v711_v14 }
 0xc06   :  { %vm431_vm8 = vmor %vm429_vm7, %vm430_vm6 }
 0xc07   :  { %v426_v16 = vsub.f32 1.0, %v425_v15 }
 0xc09   :  { %v427_v17 = vmul.f32 %v711_v14, %v426_v16 }
 0xc0b   :  { %v428_v18 = vadd.f32 %v711_v14, %v427_v17 }
 0xc0d   :  { %v432_v21 = vsel %vm431_vm8, %v711_v14, %v428_v18  ;;  %v590_v18 = vld [vmem:[#allocation7 + $0x18] sm:$0xff] }
 0xc0e   :  { %v437_v24 = vsel %vm434_vm9, %v436_v22, %v432_v21  ;;  %612 = vmatpush.msra.mxu0 %v590_v18  ;;  %v587_v21 = vld [vmem:[#allocation7] sm:$0xff] }
 0xc0f   :  { %v440_v26 = vmul.f32 %v437_v24, %v385_v2 }
 0xc10   :  { %613 = vmatpush.msra.mxu0 %v589_v19 }
 0xc12   :  { %614 = vmatpush.msra.mxu0 %v588_v20 }
 0xc14   :  { %615 = vmatpush.msra.mxu0 %v587_v21 }
 0xc54   :  { %v443_v23 = vpop.permute.xlu2 %442 }
 0xc55   :  { %v445_v25 = vmul.f32 %v443_v23, %v437_v24 }
 0xc57   :  { %447 = vrot.lane.b32.xlu0 %v445_v25, %s836_s27  ;;  %v665_v25 = vld [vmem:[%s927_s3] ss:$0 sm:$0xff] }
 0xcc9   :  { %v448_v27 = vpop.permute.xlu0 %447 }
 0xcca   :  { %v450_v28 = vadd.f32 %v448_v27, %v440_v26 }
 0xccc   :  { %712 = vtanh.f32 %v450_v28 }
 0xcd2   :  { %v713_v29 = vpop.eup %712 }
 0xcd3   :  { %453 = vrot.lane.b32.xlu1 %v713_v29, %s836_s27 }
 0xd45   :  { %v454_v30 = vpop.permute.xlu1 %453 }
 0xd46   :  { %v456_v31 = vmul.f32 %v454_v30, %v437_v24 }
 0xd48   :  { %460 = vrot.lane.b32.xlu2 %v456_v31, %s840_s0 }
 0xda2   :  { %v461_v32 = vpop.permute.xlu2 %460 }
 0xda3   :  { %650 = vmatmul.msk.f32.vlgmr.msrb.gmra.mxu2 %vm70_vm4, %v461_v32 }
 0xe26   :  { %v481_v34 = vpop.f32.mrf.mxu2 }
 0xe27   :  { %v484_v35 = vadd.f32 %v481_v34, %v458_v33 }
 0xe29   :  { %714 = vtanh.f32 %v484_v35  ;;  %v651_v37 = vmul.f32 -1.442695, %v484_v35 }
 0xe2b   :  { %716 = vpow2.f32 %v651_v37 }
 0xe2f   :  { %v715_v36 = vpop.eup %714 }
 0xe30   :  { %507 = vrot.lane.b32.xlu0 %v715_v36, %s836_s27 }
 0xe31   :  { %v717_v38 = vpop.eup %716 }
 0xe32   :  { %v488_v39 = vadd.f32 1.0, %v717_v38 }
 0xe34   :  { %718 = vrcp.f32 %v488_v39  ;;  %v500_v45 = vand.u32 2147483648, %v488_v39  ;;  %vm494_vm11 = vweird.f32 %v488_v39  ;;  %v498_v46 = vand.u32 2147483647, %v488_v39 }
 0xe36   :  { %v501_v48 = vor.u32 1.1754944e-38, %v500_v45  ;;  %vm499_vm13 = vcmp.eq.f32.partialorder %v498_v46, 8.507059e+37 }
 0xe3a   :  { %v719_v40 = vpop.eup %718 }
 0xe3b   :  { %v490_v41 = vmul.f32 %v719_v40, %v488_v39  ;;  %vm495_vm10 = vweird.f32 %v719_v40 }
 0xe3c   :  { %vm496_vm12 = vmor %vm494_vm11, %vm495_vm10 }
 0xe3d   :  { %v491_v42 = vsub.f32 1.0, %v490_v41 }
 0xe3f   :  { %v492_v43 = vmul.f32 %v719_v40, %v491_v42 }
 0xe41   :  { %v493_v44 = vadd.f32 %v719_v40, %v492_v43 }
 0xe43   :  { %v497_v47 = vsel %vm496_vm12, %v719_v40, %v493_v44 }
 0xe44   :  { %v502_v50 = vsel %vm499_vm13, %v501_v48, %v497_v47 }
 0xe45   :  { %v505_v52 = vmul.f32 %v502_v50, %v450_v28 }
 0xea2   :  { %v508_v49 = vpop.permute.xlu0 %507 }
 0xea3   :  { %v510_v51 = vmul.f32 %v508_v49, %v502_v50 }
 0xea5   :  { %512 = vrot.lane.b32.xlu1 %v510_v51, %s836_s27 }
 0xf17   :  { %v513_v53 = vpop.permute.xlu1 %512 }
 0xf18   :  { %v515_v54 = vadd.f32 %v513_v53, %v505_v52 }
 0xf1a   :  { %720 = vtanh.f32 %v515_v54 }
 0xf20   :  { %v721_v55 = vpop.eup %720 }
 0xf21   :  { %518 = vrot.lane.b32.xlu2 %v721_v55, %s836_s27 }
 0xf7b   :  { %v519_v56 = vpop.permute.xlu2 %518 }
 0xf7c   :  { %v521_v57 = vmul.f32 %v519_v56, %v502_v50 }
 0xf7e   :  { %525 = vrot.lane.b32.xlu0 %v521_v57, %s840_s0 }
 0xff0   :  { %v526_v58 = vpop.permute.xlu0 %525 }
 0xff1   :  { %652 = vmatmul.msk.f32.vlgmr.msrb.gmra.mxu3 %vm70_vm4, %v526_v58 }
0x1074   :  { %v546_v60 = vpop.f32.mrf.mxu3 }
0x1075   :  { %v549_v61 = vadd.f32 %v546_v60, %v523_v59 }
0x1077   :  { %722 = vtanh.f32 %v549_v61  ;;  %v653_v63 = vmul.f32 -1.442695, %v549_v61 }
0x1079   :  { %724 = vpow2.f32 %v653_v63 }
0x107d   :  { %v723_v62 = vpop.eup %722 }
0x107e   :  { %572 = vrot.lane.b32.xlu1 %v723_v62, %s836_s27 }
0x107f   :  { %v725_v0 = vpop.eup %724 }
0x1080   :  { %v553_v1 = vadd.f32 1.0, %v725_v0 }
0x1082   :  { %726 = vrcp.f32 %v553_v1  ;;  %v565_v7 = vand.u32 2147483648, %v553_v1  ;;  %vm559_vm15 = vweird.f32 %v553_v1  ;;  %v563_v8 = vand.u32 2147483647, %v553_v1 }
0x1084   :  { %v566_v10 = vor.u32 1.1754944e-38, %v565_v7  ;;  %vm564_vm1 = vcmp.eq.f32.partialorder %v563_v8, 8.507059e+37 }
0x1088   :  { %v727_v2 = vpop.eup %726 }
0x1089   :  { %v555_v3 = vmul.f32 %v727_v2, %v553_v1  ;;  %vm560_vm14 = vweird.f32 %v727_v2 }
0x108a   :  { %vm561_vm0 = vmor %vm559_vm15, %vm560_vm14 }
0x108b   :  { %v556_v4 = vsub.f32 1.0, %v555_v3 }
0x108d   :  { %v557_v5 = vmul.f32 %v727_v2, %v556_v4 }
0x108f   :  { %v558_v6 = vadd.f32 %v727_v2, %v557_v5 }
0x1091   :  { %v562_v9 = vsel %vm561_vm0, %v727_v2, %v558_v6 }
0x1092   :  { %v567_v12 = vsel %vm564_vm1, %v566_v10, %v562_v9 }
0x1093   :  { %v570_v14 = vmul.f32 %v567_v12, %v515_v54 }
0x10f0   :  { %v573_v11 = vpop.permute.xlu1 %572 }
0x10f1   :  { %v575_v13 = vmul.f32 %v573_v11, %v567_v12 }
0x10f3   :  { %577 = vrot.lane.b32.xlu2 %v575_v13, %s836_s27 }
0x114d   :  { %v578_v15 = vpop.permute.xlu2 %577 }
0x114e   :  { %v580_v16 = vadd.f32 %v578_v15, %v570_v14 }
0x1150   :  { %728 = vtanh.f32 %v580_v16 }
0x1156   :  { %v729_v17 = vpop.eup %728 }
0x1157   :  { %583 = vrot.lane.b32.xlu0 %v729_v17, %s836_s27 }
0x11c9   :  { %v584_v22 = vpop.permute.xlu0 %583 }
0x11ca   :  { %v586_v23 = vmul.f32 %v584_v22, %v567_v12 }
0x11cc   :  { %596 = vrot.lane.b32.xlu1 %v586_v23, %s840_s0 }
0x123e   :  { %v597_v24 = vpop.permute.xlu1 %596 }
0x123f   :  { %654 = vmatmul.msk.f32.vlgmr.msra.gmra.mxu0 %vm70_vm4, %v597_v24 }
0x12bc   :  { %v617_v26 = vpop.f32.mrf.mxu0 }
0x12bd   :  { %v618_v27 = vadd.f32 %v665_v25, %v617_v26 }
0x12bf   :  { %620 = vst [vmem:[#allocation8] sm:$0x3] %v618_v27 }
0x12c0   :  { %631 = dma.vmem_to_hbm [thread:$0]  %s627_s9, 32, %s629_s12, [#allocation4]  }
0x12c1   :  { %830 = dma.done.wait [#allocation4], 32  }
0x12c2   :  { %831 = vsyncadd [#allocation4], 4294967264 }
0x12c3   :  { %636 = vsyncpa [#allocation3], 1 }
0x12c4   :  { %637 = vsyncpa [#allocation6], 1 }
0x12c5   :  { %638 = vsyncpa [#allocation4], 1 }

</bundles_post_ra>
